<compile_context>
chip_gen: v5e
topology: v5e:2x2
jax: 0.10.0
libtpu: 0.0.40
codegen_flags: <defaults>
</compile_context>

<pallas_src>
import functools

import jax
import jax.numpy as jnp
from jax.experimental import pallas as pl
from jax.experimental.pallas import tpu as pltpu


def _cross_fusion_kernel(xs_ref, xt_ref, w_ref, b_ref, o_ref, *, nb):
    """One (nb, C, ts) tile: out = xt + W' @ xs + b' (W', b' gate-folded).

    xs_ref, xt_ref, o_ref : (nb, C, ts)  channels on sublanes, spatial on lanes
    w_ref                 : (C, C)       gate-folded conv weight (Cout, Cin)
    b_ref                 : (C, 1)       gate-folded bias (f32)
    """
    w = w_ref[...]
    b = b_ref[...]
    for i in range(nb):  # nb is a small trace-time constant -> unrolled
        y = jnp.dot(w, xs_ref[i], preferred_element_type=jnp.float32)
        fused = xt_ref[i].astype(jnp.float32) + y + b
        o_ref[i] = fused.astype(o_ref.dtype)


def _round_down(x, m):
    return (x // m) * m


def _round_up(x, m):
    return ((x + m - 1) // m) * m


def _vmem_capacity_bytes():
    """Physical VMEM per TensorCore; conservative 64 MiB fallback (v7x-sized)."""
    try:
        info = pltpu.get_tpu_info()
        for name in ("vmem_capacity_bytes", "vmem_size_bytes", "vmem_bytes"):
            cap = getattr(info, name, None)
            if cap:
                return int(cap)
    except Exception:
        pass
    return 64 * 1024 * 1024


def _plan_tiles(N, C, S, x_dtype, param_itemsize):
    """Pick (nb, ts, grid, vmem_limit) from byte budgets, per generation."""
    itemsize = jnp.dtype(x_dtype).itemsize
    sublane = max(8, 32 // itemsize)          # 8 (f32), 16 (bf16), 32 (int8)
    c_pad = _round_up(C, sublane)             # VMEM sublane padding of a tile

    vmem_cap = _vmem_capacity_bytes()
    # Double-buffered constant params (weight + f32 bias) are always resident.
    params_bytes = 2 * (C * C * param_itemsize + C * 4)

    # VMEM budget for the 6 double-buffered streaming tiles (xs, xt, out).
    stream_budget = int(0.4 * max(vmem_cap - params_bytes, 0))
    stream_budget = max(min(stream_budget, 48 << 20), 6 << 20)
    per_tile_bytes = stream_budget // 6
    per_tile_elems = max(per_tile_bytes // itemsize, sublane * 128)

    # ---- spatial (lane) tile: multiple of 128, balanced across steps ----
    if S <= 128:
        ts = S                                            # full-extent block
    else:
        ts_cap = max(128, _round_down(per_tile_elems // c_pad, 128))
        k = pl.cdiv(S, ts_cap)                            # number of spatial tiles
        ts = min(_round_up(pl.cdiv(S, k), 128), ts_cap, S)

    # ---- batch tile: amortize per-step overhead when per-sample tile is small ----
    tile_bytes_1 = c_pad * ts * itemsize
    target_tile_bytes = 2 << 20                           # ~6 MiB HBM / grid step
    nb_target = -(-target_tile_bytes // tile_bytes_1)
    nb_budget = max(1, per_tile_elems // (c_pad * ts))
    nb = max(1, min(N, nb_budget, nb_target, 16))

    grid_n, grid_s = pl.cdiv(N, nb), pl.cdiv(S, ts)
    # Keep >= 2 program instances along parallel axes when possible (v7x: 2 TCs).
    if grid_n * grid_s < 2:
        if N >= 2:
            nb = (N + 1) // 2
        elif S >= 256:
            ts = min(_round_up(pl.cdiv(S, 2), 128), S)
        grid_n, grid_s = pl.cdiv(N, nb), pl.cdiv(S, ts)

    need = params_bytes + 6 * nb * c_pad * ts * itemsize
    vmem_limit = max(need + (2 << 20), 16 << 20)
    vmem_limit = min(vmem_limit, vmem_cap)
    vmem_limit = max(vmem_limit, need)                    # never below actual need
    return nb, ts, (grid_n, grid_s), int(vmem_limit)


def cross_fusion_block(x_src, x_tgt, weight, bias, gate):
    """Pallas TPU implementation of CrossFusionBlock.forward.

    x_src, x_tgt : (N, C, H, W)
    weight       : (C, C, 1, 1)   nn.Conv2d(C, C, kernel_size=1) weight
    bias         : (C,)
    gate         : (1, C, 1, 1)
    """
    N, C, H, W = x_src.shape
    S = H * W

    # NCHW consumed directly: (N, C, S); spatial is the lane (last) axis.
    xs = x_src.reshape(N, C, S)
    xt = x_tgt.reshape(N, C, S)

    # Fold the gate into the conv parameters:  out = xt + (g*W) @ xs + g*b.
    g = gate.reshape(C, 1).astype(jnp.float32)
    w = weight.reshape(C, C).astype(jnp.float32) * g      # rows (out-ch) scaled
    b = bias.reshape(C, 1).astype(jnp.float32) * g        # (C, 1), kept f32

    # Low-precision inputs: keep the folded weight in the input dtype so the
    # MXU dot is single-pass; accumulation stays f32 via preferred_element_type.
    if x_src.dtype != jnp.float32:
        w = w.astype(x_src.dtype)

    nb, ts, grid, vmem_limit = _plan_tiles(
        N, C, S, x_src.dtype, jnp.dtype(w.dtype).itemsize)

    out = pl.pallas_call(
        functools.partial(_cross_fusion_kernel, nb=nb),
        out_shape=jax.ShapeDtypeStruct((N, C, S), x_src.dtype),
        grid_spec=pltpu.PrefetchScalarGridSpec(
            num_scalar_prefetch=0,
            grid=grid,
            in_specs=[
                pl.BlockSpec((nb, C, ts), lambda n, s: (n, 0, s)),  # x_src tile
                pl.BlockSpec((nb, C, ts), lambda n, s: (n, 0, s)),  # x_tgt tile
                pl.BlockSpec((C, C), lambda n, s: (0, 0)),          # folded weight
                pl.BlockSpec((C, 1), lambda n, s: (0, 0)),          # folded bias
            ],
            out_specs=pl.BlockSpec((nb, C, ts), lambda n, s: (n, 0, s)),
        ),
        compiler_params=pltpu.CompilerParams(
            dimension_semantics=("parallel", "parallel"),
            vmem_limit_bytes=vmem_limit,
        ),
    )(xs, xt, w, b)

    return out.reshape(N, C, H, W)


def _reference(x_src, x_tgt, weight, bias, gate):
    # Plain-JAX reference of the PyTorch forward (1x1 conv == channel matmul).
    N, C, H, W = x_src.shape
    w = weight.reshape(C, C)                               # (Cout, Cin)
    y = jnp.einsum('nchw,oc->nohw', x_src, w) + bias.reshape(1, C, 1, 1)
    return x_tgt + gate * y


if __name__ == "__main__":
    key = jax.random.PRNGKey(0)
    N, C, H, W = 2, 4, 16, 16

    k1, k2, k3, k4 = jax.random.split(key, 4)
    x_src = jax.random.normal(k1, (N, C, H, W), dtype=jnp.float32)
    x_tgt = jax.random.normal(k2, (N, C, H, W), dtype=jnp.float32)

    # Deterministic synthetic parameters (shapes match nn.Conv2d(C, C, 1, bias=True)
    # and nn.Parameter(torch.ones(1, C, 1, 1))).
    fan_in = C  # kernel_size = 1
    bound = 1.0 / (fan_in ** 0.5)
    weight = jax.random.uniform(k3, (C, C, 1, 1), minval=-bound, maxval=bound,
                                dtype=jnp.float32)
    bias = jax.random.uniform(k4, (C,), minval=-bound, maxval=bound,
                              dtype=jnp.float32)
    gate = jnp.ones((1, C, 1, 1), dtype=jnp.float32)

    out = cross_fusion_block(x_src, x_tgt, weight, bias, gate)
    out = jax.block_until_ready(out)

    ref = _reference(x_src, x_tgt, weight, bias, gate)
    assert out.shape == (N, C, H, W)
    assert jnp.allclose(out, ref, atol=1e-5, rtol=1e-5), "mismatch vs reference"

    print("KERNEL_OK")
</pallas_src>

<mosaic_0001>
module attributes {stable_mosaic.version = 11 : i64} {
  func.func @_cross_fusion_kernel(%arg0: i32, %arg1: i32, %arg2: memref<1x4x256xf32, #tpu.memory_space<vmem>>, %arg3: memref<1x4x256xf32, #tpu.memory_space<vmem>>, %arg4: memref<4x4xf32, #tpu.memory_space<vmem>>, %arg5: memref<4x1xf32, #tpu.memory_space<vmem>>, %arg6: memref<1x4x256xf32, #tpu.memory_space<vmem>>) attributes {dimension_semantics = [#tpu.dimension_semantics<parallel>, #tpu.dimension_semantics<parallel>], iteration_bounds = array<i64: 2, 1>, scalar_prefetch = 0 : i64, scratch_operands = 0 : i64, tpu.core_type = #tpu.core_type<tc>, window_params = [{transform_indices = @transform_0, window_bounds = array<i64: 1, 4, 256>}, {transform_indices = @transform_1, window_bounds = array<i64: 1, 4, 256>}, {pipeline_mode = #tpu.pipeline_mode<synchronous>, transform_indices = @transform_2, window_bounds = array<i64: 4, 4>}, {pipeline_mode = #tpu.pipeline_mode<synchronous>, transform_indices = @transform_3, window_bounds = array<i64: 4, 1>}, {transform_indices = @transform_4, window_bounds = array<i64: 1, 4, 256>}]} {
    %c0 = arith.constant 0 : index
    %c0_0 = arith.constant 0 : index
    %0 = vector.load %arg4[%c0, %c0_0] : memref<4x4xf32, #tpu.memory_space<vmem>>, vector<4x4xf32>
    %c0_1 = arith.constant 0 : index
    %c0_2 = arith.constant 0 : index
    %1 = vector.load %arg5[%c0_1, %c0_2] : memref<4x1xf32, #tpu.memory_space<vmem>>, vector<4x1xf32>
    %c0_3 = arith.constant 0 : index
    %c0_4 = arith.constant 0 : index
    %c0_5 = arith.constant 0 : index
    %2 = vector.load %arg2[%c0_3, %c0_4, %c0_5] : memref<1x4x256xf32, #tpu.memory_space<vmem>>, vector<1x4x256xf32>
    %3 = vector.shape_cast %2 : vector<1x4x256xf32> to vector<4x256xf32>
    %cst = arith.constant dense<0.000000e+00> : vector<4x256xf32>
    %4 = tpu.matmul %0, %3, %cst {dimension_numbers = #tpu.dot_dimension_numbers<[1], [0], [0], [1], [0, 0, 1, 1], [], []>} : vector<4x4xf32>, vector<4x256xf32>, vector<4x256xf32> -> vector<4x256xf32>
    %c0_6 = arith.constant 0 : index
    %c0_7 = arith.constant 0 : index
    %c0_8 = arith.constant 0 : index
    %5 = vector.load %arg3[%c0_6, %c0_7, %c0_8] : memref<1x4x256xf32, #tpu.memory_space<vmem>>, vector<1x4x256xf32>
    %6 = vector.shape_cast %5 : vector<1x4x256xf32> to vector<4x256xf32>
    %7 = arith.addf %6, %4 : vector<4x256xf32>
    %8 = vector.broadcast %1 : vector<4x1xf32> to vector<4x256xf32>
    %9 = arith.addf %7, %8 : vector<4x256xf32>
    %c0_9 = arith.constant 0 : index
    %c0_10 = arith.constant 0 : index
    %c0_11 = arith.constant 0 : index
    %10 = vector.load %arg6[%c0_9, %c0_10, %c0_11] : memref<1x4x256xf32, #tpu.memory_space<vmem>>, vector<1x4x256xf32>
    %11 = vector.shape_cast %10 : vector<1x4x256xf32> to vector<4x256xf32>
    %12 = vector.shape_cast %9 : vector<4x256xf32> to vector<1x4x256xf32>
    tpu.vector_store %arg6[%c0_9, %c0_10, %c0_11], %12 {strides = array<i32>} : memref<1x4x256xf32, #tpu.memory_space<vmem>>, vector<1x4x256xf32>,
    return
  }
  func.func @transform_0(%arg0: i32, %arg1: i32) -> (i32, i32, i32) {
    %c0_i32 = arith.constant 0 : i32
    %c0_i32_0 = arith.constant 0 : i32
    return %arg0, %c0_i32, %arg1 : i32, i32, i32
  }
  func.func @transform_1(%arg0: i32, %arg1: i32) -> (i32, i32, i32) {
    %c0_i32 = arith.constant 0 : i32
    %c0_i32_0 = arith.constant 0 : i32
    return %arg0, %c0_i32, %arg1 : i32, i32, i32
  }
  func.func @transform_2(%arg0: i32, %arg1: i32) -> (i32, i32) {
    %c0_i32 = arith.constant 0 : i32
    %c0_i32_0 = arith.constant 0 : i32
    %c0_i32_1 = arith.constant 0 : i32
    return %c0_i32, %c0_i32_0 : i32, i32
  }
  func.func @transform_3(%arg0: i32, %arg1: i32) -> (i32, i32) {
    %c0_i32 = arith.constant 0 : i32
    %c0_i32_0 = arith.constant 0 : i32
    %c0_i32_1 = arith.constant 0 : i32
    return %c0_i32, %c0_i32_0 : i32, i32
  }
  func.func @transform_4(%arg0: i32, %arg1: i32) -> (i32, i32, i32) {
    %c0_i32 = arith.constant 0 : i32
    %c0_i32_0 = arith.constant 0 : i32
    return %arg0, %c0_i32, %arg1 : i32, i32, i32
  }
}

</mosaic_0001>

<bundles_post_ra>
// kernel: tpu_custom_call.1
= control target key start
LH: loop header
LB: loop body
LE: loop exit
PB: predicated region body
PF: predicated region fallthrough
CT: control target
= control target key end

     0   :  { %9 = vsyncpa [#allocation3], 0  ;;  %s897_s0 = inlined_call_operand.hbm [shape: f32[2,4,256], index: 0, kind: input, shape index: {}]   ;;  %s898_s1 = inlined_call_operand.hbm [shape: f32[2,4,256], index: 1, kind: input, shape index: {}]   ;;  %s899_s2 = inlined_call_operand.vmem [shape: f32[4,4], index: 2, kind: input, shape index: {}]   ;;  %s900_s3 = inlined_call_operand.vmem [shape: f32[4,1], index: 3, kind: input, shape index: {}]   ;;  %s901_s4 = inlined_call_operand.hbm [shape: f32[2,4,256], index: 4, kind: output, shape index: {}]  }
   0x1   :  { %11 = vsyncpa [#allocation3 + $0x1], 0 }
   0x2   :  { %12 = vsyncpa [#allocation6], 0 }
   0x3   :  { %14 = vsyncpa [#allocation6 + $0x1], 0 }
   0x4   :  { %15 = vsyncpa [#allocation4], 0 }
   0x5   :  { %17 = vsyncpa [#allocation4 + $0x1], 0  ;;  %s755_s15 = smov 0   ;;  %s757_s16 = smov 0  }
   0x6   :  { %s759_s17 = smov 0   ;;  %s761_s18 = smov 0  }
   0x7   :  { %s763_s19 = smov 0   ;;  %s765_s20 = smov 0  }
   0x8 LB: > { %s484_s21 = sadd.s32 4294967295, %s726_s20   ;;  %s485_s22 = sadd.s32 4294967294, %s726_s20   ;;  %s726_s20 = sphi %s765_s20, %s23_s20   ;;  %s722_s19 = sphi %s763_s19, %s913_s19   ;;  %s718_s18 = sphi %s761_s18, %s912_s18   ;;  %s714_s17 = sphi %s759_s17, %s911_s17   ;;  %s710_s16 = sphi %s757_s16, %s910_s16   ;;  %s706_s15 = sphi %s755_s15, %s909_s15  }
   0x9   : > { %s35_s23 = sadd.s32 1, %s722_s19  ;;  %s44_s24 = sadd.s32 1, %s714_s17 }
   0xa   : > { %p37_p0 = scmp.ge.s32.totalorder %s35_s23, 2  ;;  %p51_p1 = scmp.ne.s32.totalorder %s714_s17, %s710_s16 }
   0xb   : > { %p52_p2 = scmp.eq.s32.totalorder %s726_s20, 0  ;;  %p57_p3 = scmp.ne.s32.totalorder %s710_s16, %s706_s15 }
   0xc   : > { %s915_s23 = smov (%p37_p0, %s35_s23), 0  ;;  %p58_p5 = scmp.eq.s32.totalorder %s484_s21, 0 }
   0xd   : > { %903 = sst [smem:[#allocation11_spill]] %s915_s23  ;;  %p796_p4 = por %p52_p2, %p51_p1 }
   0xe   : > { %s39_s26 = ssub.s32 %s722_s19, %s915_s23  ;;  %p153_p6 = scmp.eq.s32.totalorder %s484_s21, 1 }
   0xf   : > { %p42_p7 = scmp.eq.s32.totalorder %s39_s26, 0  ;;  %p802_p8 = por %p58_p5, %p57_p3 }
  0x10   : > { %p806_p9 = por %p153_p6, %p51_p1  ;;  %p159_p10 = scmp.eq.s32.totalorder %s485_s22, 1 }
  0x11   : > { %s811_s29 = scalar_select %p42_p7, %s714_s17, %s44_s24  }
  0x12   : > { %p813_p11 = por %p159_p10, %p57_p3  ;;  %p487_p12 = scmp.ge.s32.totalorder %s726_s20, 2 }
  0x13   : > { %p527_p13 = scmp.lt.s32.totalorder %s726_s20, 2  ;;  %s185_s5 = sand.u32 1, %s714_s17  }
  0x14   : > { %s488_s6 = sshll.u32 %s185_s5, 3  ;;  %s507_s7 = sshll.u32 %s722_s19, 3 }
  0x15   : > { %s196_s10 = scalar_lea.hbm %s897_s0, %s507_s7  ;;  %s189_s11 = scalar_lea.vmem [#allocation2], %s488_s6 }
  0x16   : > { %s200_s12 = sshll.u32 %s189_s11, 4  ;;  %s198_s13 = sshll.u32 %s196_s10, 4  ;;  %s201_s12 = int_to_ptr.vmem [resolvable:$true] %s200_s12  ;;  %s199_s13 = int_to_ptr.hbm [resolvable:$true] %s198_s13 }
  0x17   : > { %p517_p0 = pnand %p527_p13, %p796_p4  ;;  %p494_p1 = scmp.ge.s32.totalorder %s726_s20, 1 }
  0x18   : > { %p227_p2 = scmp.lt.s32.totalorder %s726_s20, 3  ;;  %s186_s14 = scalar_lea.sflag [#allocation3], %s185_s5 }
  0x19   : > { %519 = dma.hbm_to_vmem [thread:$0]  (!%p517_p0), %s199_s13, 128, %s201_s12, %s186_s14  }
  0x1a   : > { %p228_p3 = pnand %p494_p1, %p227_p2  ;;  %s218_s24 = scalar_lea.hbm %s898_s1, %s507_s7 }
  0x1b   : > { %s211_s26 = scalar_lea.vmem [#allocation5], %s488_s6  ;;  %s220_s8 = sshll.u32 %s218_s24, 4  ;;  %s221_s8 = int_to_ptr.hbm [resolvable:$true] %s220_s8 }
  0x1c   : > { %s222_s23 = sshll.u32 %s211_s26, 4  ;;  %s208_s9 = scalar_lea.sflag [#allocation6], %s185_s5  ;;  %s223_s23 = int_to_ptr.vmem [resolvable:$true] %s222_s23 }
  0x1d   : > { %522 = dma.hbm_to_vmem [thread:$0]  (!%p517_p0), %s221_s8, 128, %s223_s23, %s208_s9  }
  0x1e   : > { %231 = sbr.rel (%p228_p3) target bundleno = 184 (0xb8), region = 36  ;;  %s832_s25 = sand.u32 (!%p228_p3), 1, %s710_s16  }
  0x1f   : > { %s835_s10 = sshll.u32 (!%p228_p3), %s832_s25, 3  ;;  %s234_s11 = scalar_lea.sflag (!%p228_p3), [#allocation3], %s832_s25 }
  0x20   : > { %s237_s12 = scalar_lea.vmem (!%p228_p3), [#allocation2], %s835_s10 }
  0x23   : > { %693 = dma.done.wait (%p802_p8), %s234_s11, 128  }
  0x24   : > { %695 = vsyncadd (%p802_p8), %s234_s11, 4294967168  ;;  %s244_s23 = scalar_lea.sflag [#allocation6], %s832_s25  ;;  %s247_s5 = scalar_lea.vmem [#allocation5], %s835_s10 }
  0x25   : > { %697 = dma.done.wait (%p802_p8), %s244_s23, 128  }
  0x26   : > { %699 = vsyncadd (%p802_p8), %s244_s23, 4294967168  ;;  %v728_v0 = vmov 0   ;;  %v283_v1 = vld [vmem:[%s237_s12] sm:$0xff]  ;;  %v282_v2 = vld [vmem:[%s900_s3] sm:$0xf]  ;;  %vm292_vm0 = vcmask 1043456  }
  0x27   : > { %579 = vset.pattern.permute.xlu0 %v728_v0  ;;  %285 = vst [vmem:[#allocation1] ss:$2 sm:$0xff] %v283_v1  ;;  %v281_v3 = vld [vmem:[%s899_s2] sm:$0xf]  ;;  %vm288_vm1 = vcmask 31744   ;;  %s509_s27 = sshll.u32 %s718_s18, 3 }
  0x28   : > { %346 = vperm.xlu0 %579, %v282_v2   ;;  %v729_v6 = vmov 839922192   ;;  %s369_s24 = scalar_lea.hbm %s901_s4, %s509_s27  ;;  %v337_v13 = vld [vmem:[%s247_s5] sm:$0xff]  ;;  %s277_s26 = scalar_lea.vmem [#allocation7], %s835_s10 }
  0x29   : > { %v349_v7 = vunpack.c.l.s4 %v729_v6  ;;  %s371_s8 = sshll.u32 %s277_s26, 4  ;;  %s373_s9 = sshll.u32 %s369_s24, 4  ;;  %s372_s8 = int_to_ptr.vmem [resolvable:$true] %s371_s8  ;;  %s374_s9 = int_to_ptr.hbm [resolvable:$true] %s373_s9 }
  0x2a   : > { %s356_s18 = scalar_lea.sflag [#allocation4], %s832_s25  ;;  %s654_s11 = sshra.s32 %s374_s9, 4  ;;  %s655_s11 = int_to_ptr.hbm [resolvable:$true] %s654_s11 }
  0x2b   : > { %v350_v8 = vunpack.c.0.s8 %v349_v7  ;;  %s656_s12 = scalar_lea.hbm %s655_s11, 8  ;;  %s660_s6 = scalar_lea.hbm %s901_s4, 16 }
  0x2c   : > { %p657_p4 = scmp.ne.s32.totalorder %s655_s11, %s656_s12  ;;  %p661_p7 = scmp.lt.s32.totalorder %s655_s11, %s901_s4 }
  0x2d   : > { %p662_p8 = scmp.lt.s32.totalorder %s660_s6, %s656_s12 }
  0x2e   : > { %v287_v4 = vld.sshfl [vmem:[#allocation1 + $0x8] sm:$0xff pattern:$0x75316420]  ;;  %v286_v5 = vld.sshfl [vmem:[#allocation1] sm:$0xff pattern:$0x75316420]  ;;  %p658_p5 = pnand %p657_p4, %p806_p9 }
  0x2f   : > { %500 = vmatpush.msk.msra.mxu1 %vm292_vm0, %v287_v4  ;;  %498 = vmatpush.msk.msra.mxu0 %vm292_vm0, %v286_v5  ;;  %p663_p10 = por %p662_p8, %p661_p7 }
  0x30   : > { %501 = vmatmul.msk.f32.vlgmr.msra.gmra.mxu1 %vm288_vm1, %v281_v3  ;;  %499 = vmatmul.msk.f32.vlgmr.msra.gmra.mxu0 %vm288_vm1, %v281_v3  ;;  %p659_p6 = pneg %p658_p5 }
  0x32   : > { %p664_p13 = pnand %p663_p10, %p659_p6 }
  0x9a   : > { %v347_v9 = vpop.permute.xlu0 %346 }
  0x9b   : > { %v351_v14 = vperm.slane %v347_v9, %v350_v8 }
  0xad   : > { %v334_v10 = vpop.f32.mrf.mxu1  ;;  %v314_v11 = vpop.f32.mrf.mxu0 }
  0xae   : > { %v340_v12 = vrot.slane %v334_v10, 4 }
  0xb0   : > { %v341_v15 = vsel %vm292_vm0, %v314_v11, %v340_v12 }
  0xb1   : > { %v343_v16 = vadd.f32 %v341_v15, %v337_v13 }
  0xb3   : > { %v353_v17 = vadd.f32 %v351_v14, %v343_v16 }
  0xb5   : > { %354 = vst [vmem:[%s277_s26] sm:$0xff] %v353_v17 }
  0xb6   : > { %667 = shalt.err (!%p664_p13)
}
  0xb7   : > { %514 = dma.vmem_to_hbm [thread:$0]  (%p806_p9), %s372_s8, 128, %s374_s9, %s356_s18  }
  0xb8 PF: > { %s385_s25 = sand.u32 1, %s706_s15   ;;  %p524_p0 = pnand %p487_p12, %p813_p11 }
  0xb9   : > { %s386_s13 = scalar_lea.sflag [#allocation4], %s385_s25 }
  0xba   : > { %p525_p1 = pneg %p524_p0 }
  0xbc   : > { %701 = dma.done.wait (%p525_p1), %s386_s13, 128  }
  0xbd   : > { %703 = vsyncadd (%p525_p1), %s386_s13, 4294967168  ;;  %s23_s20 = sadd.s32 1, %s726_s20   ;;  %s908_s28 = sld [smem:[#allocation11_spill]] }
  0xbe   : > { %p20_p2 = scmp.ge.s32.totalorder %s23_s20, 4   ;;  %s909_s15 = smov %s710_s16 }
  0xbf   : > { %s910_s16 = smov %s714_s17  ;;  %s911_s17 = smov %s811_s29 }
  0xc0   : > { %s912_s18 = smov %s722_s19  ;;  %22 = sbr.rel (!%p20_p2) target bundleno = 8 (0x8), region = 94 }
  0xc3   : > { %s913_s19 = smov %s908_s28 }
  0xc5   :  { %392 = vsyncpa [#allocation3], 1 }
  0xc6   :  { %394 = vsyncpa [#allocation3 + $0x1], 1 }
  0xc7   :  { %395 = vsyncpa [#allocation6], 1 }
  0xc8   :  { %397 = vsyncpa [#allocation6 + $0x1], 1 }
  0xc9   :  { %398 = vsyncpa [#allocation4], 1 }
  0xca   :  { %400 = vsyncpa [#allocation4 + $0x1], 1 }

</bundles_post_ra>
